<compile_context>
chip_gen: v5e
topology: v5e:2x2
jax: 0.10.0
libtpu: 0.0.40
codegen_flags: <defaults>
</compile_context>

<pallas_src>
import jax
import jax.numpy as jnp
from jax.experimental import pallas as pl
from jax.experimental.pallas import tpu as pltpu

LANE = 128
SUBLANE = 8
OUT_PAD = 128                      # every layer width padded up to one lane group
LOGICAL_DIMS = [490, 50, 128, 32, 16, 3]


def _round_up(n, m):
    return ((n + m - 1) // m) * m


# ---------------------------------------------------------------------------
# Kernel: one batch tile through all five layers (MXU dots, f32 accumulation).
# ---------------------------------------------------------------------------
def fc_layer_kernel(
    x_ref,
    w1_ref, b1_ref,
    w2_ref, b2_ref,
    w3_ref, b3_ref,
    w4_ref, b4_ref,
    w5_ref, b5_ref,
    o_ref,
):
    def layer(h, w_ref, b_ref, relu):
        # Activations are cast to the weight dtype (bf16 default) for the MXU;
        # accumulation is f32, bias add / ReLU stay f32.
        h = jnp.dot(h.astype(w_ref.dtype), w_ref[...],
                    preferred_element_type=jnp.float32) + b_ref[...]
        return jnp.maximum(h, 0.0) if relu else h

    h = x_ref[...]
    h = layer(h, w1_ref, b1_ref, True)
    h = layer(h, w2_ref, b2_ref, True)
    h = layer(h, w3_ref, b3_ref, True)
    h = layer(h, w4_ref, b4_ref, True)
    h = layer(h, w5_ref, b5_ref, False)
    o_ref[...] = h.astype(o_ref.dtype)


# ---------------------------------------------------------------------------
# One-time parameter preparation (hoisted out of the per-call path).
# Pads every layer width to 128 lanes with zeros (zeros propagate exactly
# through bias-add and ReLU) and casts weights to the compute dtype.
# Biases stay f32.  Layer-1 weights keep their natural K = 490.
# ---------------------------------------------------------------------------
def prepare_params(params, weight_dtype=jnp.bfloat16):
    flat = []
    in_dim = LOGICAL_DIMS[0]          # 490; no K padding on the first layer
    for (w, b) in params:
        fin, fout = w.shape
        w_p = jnp.zeros((in_dim, OUT_PAD), jnp.float32).at[:fin, :fout].set(w)
        b_p = jnp.zeros((1, OUT_PAD), jnp.float32).at[:, :fout].set(
            jnp.reshape(b, (1, -1)))
        flat.append(w_p.astype(weight_dtype))   # weights in compute dtype
        flat.append(b_p)                         # biases stay f32
        in_dim = OUT_PAD
    return tuple(flat)


# ---------------------------------------------------------------------------
# Wrapper: batch-tiled pallas_call.  x is streamed unpadded (B, 490).
# ---------------------------------------------------------------------------
def fc_layer_forward(x, padded_params, *, tile_b=1024,
                     store_dtype=jnp.bfloat16, out_dtype=jnp.float32):
    """x: (B, 490) float32/bfloat16.  padded_params: output of prepare_params."""
    B, f_in = x.shape
    assert f_in == LOGICAL_DIMS[0], f_in

    # Batch tile: multiple of 8 (sublane), at most ceil(B/2) rounded up so the
    # grid has >= 2 tiles whenever B > 8 (keeps both v7x TensorCores fed),
    # default 1024 rows to amortize per-grid-step overhead on v6e/v7x while
    # staying ~5 MiB of VMEM even in f32 (safe on v5e's 16 MiB scoped default).
    half_b = _round_up(pl.cdiv(B, 2), SUBLANE)
    TB = max(SUBLANE, min(_round_up(tile_b, SUBLANE), half_b))
    grid = (pl.cdiv(B, TB),)   # partial last tile handled by Pallas (reads padded,
                               # out-of-range writes dropped)

    x_spec = pl.BlockSpec((TB, f_in), lambda i: (i, 0))
    # Weights/biases: whole array, constant index -> resident in VMEM, DMA'd once.
    param_specs = [pl.BlockSpec(a.shape, lambda i: (0, 0)) for a in padded_params]
    out_spec = pl.BlockSpec((TB, OUT_PAD), lambda i: (i, 0))

    # Advisory cost estimate (logical work).
    logical_flops = 2 * B * sum(
        LOGICAL_DIMS[i] * LOGICAL_DIMS[i + 1] for i in range(len(LOGICAL_DIMS) - 1))
    bytes_accessed = (
        int(x.size) * x.dtype.itemsize
        + sum(int(a.size) * a.dtype.itemsize for a in padded_params)
        + B * OUT_PAD * jnp.dtype(store_dtype).itemsize
    )

    out = pl.pallas_call(
        fc_layer_kernel,
        out_shape=jax.ShapeDtypeStruct((B, OUT_PAD), store_dtype),
        grid_spec=pltpu.PrefetchScalarGridSpec(
            num_scalar_prefetch=0,
            grid=grid,
            in_specs=[x_spec] + param_specs,
            out_specs=out_spec,
        ),
        compiler_params=pltpu.CompilerParams(
            dimension_semantics=("parallel",),
        ),
        cost_estimate=pl.CostEstimate(
            flops=logical_flops, transcendentals=0, bytes_accessed=bytes_accessed),
    )(x, *padded_params)

    # Slice the padded lanes off outside the kernel (keeps the in-kernel store
    # lane-dense) and cast to the requested output dtype (cheap: B x 3).
    return out[:, : LOGICAL_DIMS[-1]].astype(out_dtype)


# ---------------------------------------------------------------------------
# Deterministic parameter init (mimics PyTorch nn.Linear default: U(-k, k),
# k = 1/sqrt(fan_in)), stored as (in, out) / (1, out).
# ---------------------------------------------------------------------------
def init_params(key):
    params = []
    for i in range(len(LOGICAL_DIMS) - 1):
        fan_in, fan_out = LOGICAL_DIMS[i], LOGICAL_DIMS[i + 1]
        key, kw, kb = jax.random.split(key, 3)
        bound = 1.0 / jnp.sqrt(jnp.float32(fan_in))
        w = jax.random.uniform(kw, (fan_in, fan_out), jnp.float32, -bound, bound)
        b = jax.random.uniform(kb, (1, fan_out), jnp.float32, -bound, bound)
        params.append((w, b))
    return params


def fc_layer_ref(x, params):
    h = x
    for i, (w, b) in enumerate(params):
        h = h @ w + b
        if i < len(params) - 1:
            h = jnp.maximum(h, 0.0)
    return h


if __name__ == "__main__":
    key = jax.random.PRNGKey(0)
    key_x, key_p = jax.random.split(key)

    B = 10  # small batch; exercises a 2-tile grid (TB=8) with a partial last tile
    x = jax.random.normal(key_x, (B, 490), dtype=jnp.float32)
    params = init_params(key_p)
    ref = fc_layer_ref(x, params)

    # Default path: bf16 weights / bf16 MXU inputs, f32 accumulation, bf16 store.
    p_bf16 = prepare_params(params)                       # pad + cast ONCE
    out = fc_layer_forward(x, p_bf16)
    out = jax.block_until_ready(out)
    assert out.shape == (B, 3), out.shape
    assert jnp.allclose(out, ref, atol=5e-2, rtol=5e-2), "bf16 mismatch vs reference"

    # Exactness check: f32 weights + f32 store reproduce the reference closely.
    p_f32 = prepare_params(params, weight_dtype=jnp.float32)
    out_f32 = fc_layer_forward(x, p_f32, store_dtype=jnp.float32)
    out_f32 = jax.block_until_ready(out_f32)
    assert jnp.allclose(out_f32, ref, atol=1e-4, rtol=1e-4), "f32 mismatch vs reference"

    print("KERNEL_OK")
</pallas_src>

<mosaic_0001>
module attributes {stable_mosaic.version = 11 : i64} {
  func.func @fc_layer_kernel(%arg0: i32, %arg1: memref<8x490xf32, #tpu.memory_space<vmem>>, %arg2: memref<490x128xbf16, #tpu.memory_space<vmem>>, %arg3: memref<1x128xf32, #tpu.memory_space<vmem>>, %arg4: memref<128x128xbf16, #tpu.memory_space<vmem>>, %arg5: memref<1x128xf32, #tpu.memory_space<vmem>>, %arg6: memref<128x128xbf16, #tpu.memory_space<vmem>>, %arg7: memref<1x128xf32, #tpu.memory_space<vmem>>, %arg8: memref<128x128xbf16, #tpu.memory_space<vmem>>, %arg9: memref<1x128xf32, #tpu.memory_space<vmem>>, %arg10: memref<128x128xbf16, #tpu.memory_space<vmem>>, %arg11: memref<1x128xf32, #tpu.memory_space<vmem>>, %arg12: memref<8x128xbf16, #tpu.memory_space<vmem>>) attributes {dimension_semantics = [#tpu.dimension_semantics<parallel>], iteration_bounds = array<i64: 2>, scalar_prefetch = 0 : i64, scratch_operands = 0 : i64, tpu.core_type = #tpu.core_type<tc>, window_params = [{transform_indices = @transform_0, window_bounds = array<i64: 8, 490>}, {pipeline_mode = #tpu.pipeline_mode<synchronous>, transform_indices = @transform_1, window_bounds = array<i64: 490, 128>}, {pipeline_mode = #tpu.pipeline_mode<synchronous>, transform_indices = @transform_2, window_bounds = array<i64: 1, 128>}, {pipeline_mode = #tpu.pipeline_mode<synchronous>, transform_indices = @transform_3, window_bounds = array<i64: 128, 128>}, {pipeline_mode = #tpu.pipeline_mode<synchronous>, transform_indices = @transform_4, window_bounds = array<i64: 1, 128>}, {pipeline_mode = #tpu.pipeline_mode<synchronous>, transform_indices = @transform_5, window_bounds = array<i64: 128, 128>}, {pipeline_mode = #tpu.pipeline_mode<synchronous>, transform_indices = @transform_6, window_bounds = array<i64: 1, 128>}, {pipeline_mode = #tpu.pipeline_mode<synchronous>, transform_indices = @transform_7, window_bounds = array<i64: 128, 128>}, {pipeline_mode = #tpu.pipeline_mode<synchronous>, transform_indices = @transform_8, window_bounds = array<i64: 1, 128>}, {pipeline_mode = #tpu.pipeline_mode<synchronous>, transform_indices = @transform_9, window_bounds = array<i64: 128, 128>}, {pipeline_mode = #tpu.pipeline_mode<synchronous>, transform_indices = @transform_10, window_bounds = array<i64: 1, 128>}, {transform_indices = @transform_11, window_bounds = array<i64: 8, 128>}]} {
    %c0 = arith.constant 0 : index
    %c0_0 = arith.constant 0 : index
    %0 = vector.load %arg1[%c0, %c0_0] : memref<8x490xf32, #tpu.memory_space<vmem>>, vector<8x490xf32>
    %1 = arith.truncf %0 : vector<8x490xf32> to vector<8x490xbf16>
    %c0_1 = arith.constant 0 : index
    %c0_2 = arith.constant 0 : index
    %2 = vector.load %arg2[%c0_1, %c0_2] : memref<490x128xbf16, #tpu.memory_space<vmem>>, vector<490x128xbf16>
    %cst = arith.constant dense<0.000000e+00> : vector<8x128xf32>
    %3 = tpu.matmul %1, %2, %cst {dimension_numbers = #tpu.dot_dimension_numbers<[1], [0], [0], [1], [0, 0, 1, 1], [], []>} : vector<8x490xbf16>, vector<490x128xbf16>, vector<8x128xf32> -> vector<8x128xf32>
    %c0_3 = arith.constant 0 : index
    %c0_4 = arith.constant 0 : index
    %4 = vector.load %arg3[%c0_3, %c0_4] : memref<1x128xf32, #tpu.memory_space<vmem>>, vector<1x128xf32>
    %5 = vector.broadcast %4 : vector<1x128xf32> to vector<8x128xf32>
    %6 = arith.addf %3, %5 : vector<8x128xf32>
    %cst_5 = arith.constant 0.000000e+00 : f32
    %7 = vector.broadcast %cst_5 : f32 to vector<8x128xf32>
    %8 = arith.maximumf %6, %7 : vector<8x128xf32>
    %9 = arith.truncf %8 : vector<8x128xf32> to vector<8x128xbf16>
    %c0_6 = arith.constant 0 : index
    %c0_7 = arith.constant 0 : index
    %10 = vector.load %arg4[%c0_6, %c0_7] : memref<128x128xbf16, #tpu.memory_space<vmem>>, vector<128x128xbf16>
    %cst_8 = arith.constant dense<0.000000e+00> : vector<8x128xf32>
    %11 = tpu.matmul %9, %10, %cst_8 {dimension_numbers = #tpu.dot_dimension_numbers<[1], [0], [0], [1], [0, 0, 1, 1], [], []>} : vector<8x128xbf16>, vector<128x128xbf16>, vector<8x128xf32> -> vector<8x128xf32>
    %c0_9 = arith.constant 0 : index
    %c0_10 = arith.constant 0 : index
    %12 = vector.load %arg5[%c0_9, %c0_10] : memref<1x128xf32, #tpu.memory_space<vmem>>, vector<1x128xf32>
    %13 = vector.broadcast %12 : vector<1x128xf32> to vector<8x128xf32>
    %14 = arith.addf %11, %13 : vector<8x128xf32>
    %cst_11 = arith.constant 0.000000e+00 : f32
    %15 = vector.broadcast %cst_11 : f32 to vector<8x128xf32>
    %16 = arith.maximumf %14, %15 : vector<8x128xf32>
    %17 = arith.truncf %16 : vector<8x128xf32> to vector<8x128xbf16>
    %c0_12 = arith.constant 0 : index
    %c0_13 = arith.constant 0 : index
    %18 = vector.load %arg6[%c0_12, %c0_13] : memref<128x128xbf16, #tpu.memory_space<vmem>>, vector<128x128xbf16>
    %cst_14 = arith.constant dense<0.000000e+00> : vector<8x128xf32>
    %19 = tpu.matmul %17, %18, %cst_14 {dimension_numbers = #tpu.dot_dimension_numbers<[1], [0], [0], [1], [0, 0, 1, 1], [], []>} : vector<8x128xbf16>, vector<128x128xbf16>, vector<8x128xf32> -> vector<8x128xf32>
    %c0_15 = arith.constant 0 : index
    %c0_16 = arith.constant 0 : index
    %20 = vector.load %arg7[%c0_15, %c0_16] : memref<1x128xf32, #tpu.memory_space<vmem>>, vector<1x128xf32>
    %21 = vector.broadcast %20 : vector<1x128xf32> to vector<8x128xf32>
    %22 = arith.addf %19, %21 : vector<8x128xf32>
    %cst_17 = arith.constant 0.000000e+00 : f32
    %23 = vector.broadcast %cst_17 : f32 to vector<8x128xf32>
    %24 = arith.maximumf %22, %23 : vector<8x128xf32>
    %25 = arith.truncf %24 : vector<8x128xf32> to vector<8x128xbf16>
    %c0_18 = arith.constant 0 : index
    %c0_19 = arith.constant 0 : index
    %26 = vector.load %arg8[%c0_18, %c0_19] : memref<128x128xbf16, #tpu.memory_space<vmem>>, vector<128x128xbf16>
    %cst_20 = arith.constant dense<0.000000e+00> : vector<8x128xf32>
    %27 = tpu.matmul %25, %26, %cst_20 {dimension_numbers = #tpu.dot_dimension_numbers<[1], [0], [0], [1], [0, 0, 1, 1], [], []>} : vector<8x128xbf16>, vector<128x128xbf16>, vector<8x128xf32> -> vector<8x128xf32>
    %c0_21 = arith.constant 0 : index
    %c0_22 = arith.constant 0 : index
    %28 = vector.load %arg9[%c0_21, %c0_22] : memref<1x128xf32, #tpu.memory_space<vmem>>, vector<1x128xf32>
    %29 = vector.broadcast %28 : vector<1x128xf32> to vector<8x128xf32>
    %30 = arith.addf %27, %29 : vector<8x128xf32>
    %cst_23 = arith.constant 0.000000e+00 : f32
    %31 = vector.broadcast %cst_23 : f32 to vector<8x128xf32>
    %32 = arith.maximumf %30, %31 : vector<8x128xf32>
    %33 = arith.truncf %32 : vector<8x128xf32> to vector<8x128xbf16>
    %c0_24 = arith.constant 0 : index
    %c0_25 = arith.constant 0 : index
    %34 = vector.load %arg10[%c0_24, %c0_25] : memref<128x128xbf16, #tpu.memory_space<vmem>>, vector<128x128xbf16>
    %cst_26 = arith.constant dense<0.000000e+00> : vector<8x128xf32>
    %35 = tpu.matmul %33, %34, %cst_26 {dimension_numbers = #tpu.dot_dimension_numbers<[1], [0], [0], [1], [0, 0, 1, 1], [], []>} : vector<8x128xbf16>, vector<128x128xbf16>, vector<8x128xf32> -> vector<8x128xf32>
    %c0_27 = arith.constant 0 : index
    %c0_28 = arith.constant 0 : index
    %36 = vector.load %arg11[%c0_27, %c0_28] : memref<1x128xf32, #tpu.memory_space<vmem>>, vector<1x128xf32>
    %37 = vector.broadcast %36 : vector<1x128xf32> to vector<8x128xf32>
    %38 = arith.addf %35, %37 : vector<8x128xf32>
    %39 = arith.truncf %38 : vector<8x128xf32> to vector<8x128xbf16>
    %c0_29 = arith.constant 0 : index
    %c0_30 = arith.constant 0 : index
    %40 = vector.load %arg12[%c0_29, %c0_30] : memref<8x128xbf16, #tpu.memory_space<vmem>>, vector<8x128xbf16>
    tpu.vector_store %arg12[%c0_29, %c0_30], %39 {strides = array<i32>} : memref<8x128xbf16, #tpu.memory_space<vmem>>, vector<8x128xbf16>,
    return
  }
  func.func @transform_0(%arg0: i32) -> (i32, i32) {
    %c0_i32 = arith.constant 0 : i32
    %c0_i32_0 = arith.constant 0 : i32
    return %arg0, %c0_i32 : i32, i32
  }
  func.func @transform_1(%arg0: i32) -> (i32, i32) {
    %c0_i32 = arith.constant 0 : i32
    %c0_i32_0 = arith.constant 0 : i32
    %c0_i32_1 = arith.constant 0 : i32
    return %c0_i32, %c0_i32_0 : i32, i32
  }
  func.func @transform_2(%arg0: i32) -> (i32, i32) {
    %c0_i32 = arith.constant 0 : i32
    %c0_i32_0 = arith.constant 0 : i32
    %c0_i32_1 = arith.constant 0 : i32
    return %c0_i32, %c0_i32_0 : i32, i32
  }
  func.func @transform_3(%arg0: i32) -> (i32, i32) {
    %c0_i32 = arith.constant 0 : i32
    %c0_i32_0 = arith.constant 0 : i32
    %c0_i32_1 = arith.constant 0 : i32
    return %c0_i32, %c0_i32_0 : i32, i32
  }
  func.func @transform_4(%arg0: i32) -> (i32, i32) {
    %c0_i32 = arith.constant 0 : i32
    %c0_i32_0 = arith.constant 0 : i32
    %c0_i32_1 = arith.constant 0 : i32
    return %c0_i32, %c0_i32_0 : i32, i32
  }
  func.func @transform_5(%arg0: i32) -> (i32, i32) {
    %c0_i32 = arith.constant 0 : i32
    %c0_i32_0 = arith.constant 0 : i32
    %c0_i32_1 = arith.constant 0 : i32
    return %c0_i32, %c0_i32_0 : i32, i32
  }
  func.func @transform_6(%arg0: i32) -> (i32, i32) {
    %c0_i32 = arith.constant 0 : i32
    %c0_i32_0 = arith.constant 0 : i32
    %c0_i32_1 = arith.constant 0 : i32
    return %c0_i32, %c0_i32_0 : i32, i32
  }
  func.func @transform_7(%arg0: i32) -> (i32, i32) {
    %c0_i32 = arith.constant 0 : i32
    %c0_i32_0 = arith.constant 0 : i32
    %c0_i32_1 = arith.constant 0 : i32
    return %c0_i32, %c0_i32_0 : i32, i32
  }
  func.func @transform_8(%arg0: i32) -> (i32, i32) {
    %c0_i32 = arith.constant 0 : i32
    %c0_i32_0 = arith.constant 0 : i32
    %c0_i32_1 = arith.constant 0 : i32
    return %c0_i32, %c0_i32_0 : i32, i32
  }
  func.func @transform_9(%arg0: i32) -> (i32, i32) {
    %c0_i32 = arith.constant 0 : i32
    %c0_i32_0 = arith.constant 0 : i32
    %c0_i32_1 = arith.constant 0 : i32
    return %c0_i32, %c0_i32_0 : i32, i32
  }
  func.func @transform_10(%arg0: i32) -> (i32, i32) {
    %c0_i32 = arith.constant 0 : i32
    %c0_i32_0 = arith.constant 0 : i32
    %c0_i32_1 = arith.constant 0 : i32
    return %c0_i32, %c0_i32_0 : i32, i32
  }
  func.func @transform_11(%arg0: i32) -> (i32, i32) {
    %c0_i32 = arith.constant 0 : i32
    %c0_i32_0 = arith.constant 0 : i32
    return %arg0, %c0_i32 : i32, i32
  }
}

</mosaic_0001>

<bundles_post_ra>
// kernel: tpu_custom_call.1
= control target key start
LH: loop header
LB: loop body
LE: loop exit
PB: predicated region body
PF: predicated region fallthrough
CT: control target
= control target key end

     0   :  { %s2239_s0 = inlined_call_operand.hbm [shape: f32[10,490], index: 0, kind: input, shape index: {}]   ;;  %s2240_s1 = inlined_call_operand.hbm [shape: bf16[490,128], index: 1, kind: input, shape index: {}]   ;;  %s2241_s2 = inlined_call_operand.vmem [shape: f32[1,128], index: 2, kind: input, shape index: {}]   ;;  %s2242_s3 = inlined_call_operand.hbm [shape: bf16[128,128], index: 3, kind: input, shape index: {}]   ;;  %s2243_s4 = inlined_call_operand.vmem [shape: f32[1,128], index: 4, kind: input, shape index: {}]   ;;  %s2244_s5 = inlined_call_operand.hbm [shape: bf16[128,128], index: 5, kind: input, shape index: {}]   ;;  %s2245_s6 = inlined_call_operand.vmem [shape: f32[1,128], index: 6, kind: input, shape index: {}]   ;;  %s2246_s7 = inlined_call_operand.hbm [shape: bf16[128,128], index: 7, kind: input, shape index: {}]   ;;  %s2247_s8 = inlined_call_operand.vmem [shape: f32[1,128], index: 8, kind: input, shape index: {}]   ;;  %s2248_s9 = inlined_call_operand.hbm [shape: bf16[128,128], index: 9, kind: input, shape index: {}]   ;;  %s2249_s10 = inlined_call_operand.vmem [shape: f32[1,128], index: 10, kind: input, shape index: {}]   ;;  %s2250_s11 = inlined_call_operand.hbm [shape: bf16[10,128], index: 11, kind: output, shape index: {}]  }
   0x1   :  { %2251 = sst [smem:[#allocation19_spill]] %s2240_s1 }
   0x2   :  { %2252 = sst [smem:[#allocation20_spill]] %s2242_s3 }
   0x3   :  { %2253 = sst [smem:[#allocation21_spill]] %s2244_s5 }
   0x4   :  { %2254 = sst [smem:[#allocation22_spill]] %s2246_s7 }
   0x5   :  { %2255 = sst [smem:[#allocation23_spill]] %s2248_s9 }
   0x6   :  { %16 = vsyncpa [#allocation3], 0 }
   0x7   :  { %18 = vsyncpa [#allocation3 + $0x1], 0 }
   0x8   :  { %19 = vsyncpa [#allocation6], 0 }
   0x9   :  { %20 = vsyncpa [#allocation9], 0 }
   0xa   :  { %21 = vsyncpa [#allocation12], 0 }
   0xb   :  { %22 = vsyncpa [#allocation4], 0 }
   0xc   :  { %24 = vsyncpa [#allocation4 + $0x1], 0  ;;  %s2047_s17 = smov 0   ;;  %s2049_s18 = smov 0  }
   0xd   :  { %s2051_s19 = smov 0   ;;  %s2053_s20 = smov 0  }
   0xe LB: > { %s2256_s1 = sld [smem:[#allocation19_spill]]  ;;  %s2071_s24 = sadd.s32 4294967295, %s1978_s20   ;;  %s1978_s20 = sphi %s2053_s20, %s2271_s20   ;;  %s1974_s19 = sphi %s2051_s19, %s2270_s19   ;;  %s1970_s18 = sphi %s2049_s18, %s2269_s18   ;;  %s1966_s17 = sphi %s2047_s17, %s2268_s17  }
   0xf   : > { %p1277_p0 = scmp.ge.s32.totalorder %s1978_s20, 1  ;;  %p51_p1 = scmp.eq.s32.totalorder %s2071_s24, 0 }
  0x10   : > { %p297_p2 = scmp.lt.s32.totalorder %s1978_s20, 3  ;;  %s1980_s26 = smov [#allocation5]  }
  0x11   : > { %s310_s27 = sshll.u32 %s1980_s26, 4  ;;  %s2258_s5 = sld [smem:[#allocation21_spill]]  ;;  %s311_s27 = int_to_ptr.vmem [resolvable:$true] %s310_s27 }
  0x12   : > { %p2076_p3 = pnand %p1277_p0, %p297_p2  ;;  %s2260_s3 = sld [smem:[#allocation20_spill]] }
  0x13   : > { %s1981_s16 = smov [#allocation8]   ;;  %s1982_s22 = smov 64  }
  0x14   : > { %s308_s23 = sshll.u32 %s2256_s1, 4  ;;  %p1640_p4 = pneg %p2076_p3  ;;  %s309_s23 = int_to_ptr.hbm [resolvable:$true] %s308_s23 }
  0x15   : > { %s344_s21 = sshll.u32 %s1981_s16, 4  ;;  %s1983_s26 = smov 4   ;;  %s345_s21 = int_to_ptr.vmem [resolvable:$true] %s344_s21 }
  0x16   : > { %p2088_p6 = pnand %p1640_p4, %p51_p1  ;;  %s2261_s7 = sld [smem:[#allocation22_spill]] }
  0x17   : > { %s342_s30 = sshll.u32 %s2258_s5, 4  ;;  %s1984_s5 = smov [#allocation7]   ;;  %s343_s30 = int_to_ptr.hbm [resolvable:$true] %s342_s30 }
  0x18   : > { %s325_s15 = sshll.u32 %s2260_s3, 4  ;;  %s327_s13 = sshll.u32 %s1984_s5, 4  ;;  %s326_s15 = int_to_ptr.hbm [resolvable:$true] %s325_s15  ;;  %s328_s13 = int_to_ptr.vmem [resolvable:$true] %s327_s13 }
  0x19   : > { %1643 = dma.hbm_to_vmem [thread:$0]  (!%p2088_p6), %s309_s23, 3968, %s311_s27, [#allocation6], %s1982_s22, %s1982_s22, %s1983_s26  }
  0x1a   : > { %1649 = dma.hbm_to_vmem [thread:$0]  (!%p2088_p6), %s343_s30, 1024, %s345_s21, [#allocation9], %s1982_s22, %s1982_s22, %s1983_s26  }
  0x1b   : > { %1646 = dma.hbm_to_vmem [thread:$0]  (!%p2088_p6), %s326_s15, 1024, %s328_s13, [#allocation6], %s1982_s22, %s1982_s22, %s1983_s26  }
  0x1c   : > { %s359_s1 = sshll.u32 %s2261_s7, 4  ;;  %s1985_s23 = smov [#allocation10]   ;;  %s360_s1 = int_to_ptr.hbm [resolvable:$true] %s359_s1 }
  0x1d   : > { %s361_s27 = sshll.u32 %s1985_s23, 4  ;;  %s2262_s9 = sld [smem:[#allocation23_spill]]  ;;  %s362_s27 = int_to_ptr.vmem [resolvable:$true] %s361_s27 }
  0x1e   : > { %1652 = dma.hbm_to_vmem [thread:$0]  (!%p2088_p6), %s360_s1, 1024, %s362_s27, [#allocation9], %s1982_s22, %s1982_s22, %s1983_s26  }
  0x1f   : > { %s1986_s5 = smov [#allocation11]   ;;  %s1276_s15 = sadd.s32 4294967294, %s1978_s20  }
  0x20   : > { %s378_s21 = sshll.u32 %s1986_s5, 4  ;;  %s2113_s28 = sadd.s32 1, %s1978_s20   ;;  %s379_s21 = int_to_ptr.vmem [resolvable:$true] %s378_s21 }
  0x21   : > { %s37_s29 = sadd.s32 1, %s1974_s19  ;;  %s34_s13 = ssub.s32 %s1978_s20, %s2113_s28 }
  0x22   : > { %p44_p7 = scmp.ne.s32.totalorder %s1974_s19, %s1970_s18  ;;  %p35_p8 = scmp.eq.s32.totalorder %s34_s13, 0 }
  0x23   : > { %s376_s16 = sshll.u32 %s2262_s9, 4  ;;  %p45_p9 = scmp.eq.s32.totalorder %s1978_s20, 0  ;;  %s377_s16 = int_to_ptr.hbm [resolvable:$true] %s376_s16 }
  0x24   : > { %1655 = dma.hbm_to_vmem [thread:$0]  (!%p2088_p6), %s377_s16, 1024, %s379_s21, [#allocation12], %s1982_s22, %s1982_s22, %s1983_s26  }
  0x25   : > { %p50_p10 = scmp.ne.s32.totalorder %s1970_s18, %s1966_s17  ;;  %p284_p11 = scmp.eq.s32.totalorder %s2071_s24, 1 }
  0x26   : > { %s2125_s1 = scalar_select %p35_p8, %s1974_s19, %s37_s29  }
  0x27   : > { %p2129_p12 = por %p51_p1, %p50_p10  ;;  %p2133_p13 = por %p284_p11, %p44_p7 }
  0x28   : > { %p290_p0 = scmp.eq.s32.totalorder %s1276_s15, 1  ;;  %p46_p2 = por %p45_p9, %p44_p7 }
  0x29   : > { %s395_s26 = sand.u32 1, %s1974_s19   ;;  %p1669_p6 = scmp.lt.s32.totalorder %s1978_s20, 2 }
  0x2a   : > { %p2138_p4 = por %p290_p0, %p50_p10  ;;  %s1284_s27 = sshll.u32 %s395_s26, 5 }
  0x2b   : > { %s1552_s30 = sshll.u32 %s1978_s20, 5  ;;  %s399_s29 = scalar_lea.vmem [#allocation2], %s1284_s27 }
  0x2c   : > { %s404_s5 = scalar_lea.hbm %s2239_s0, %s1552_s30  ;;  %s408_s13 = sshll.u32 %s399_s29, 4  ;;  %s409_s13 = int_to_ptr.vmem [resolvable:$true] %s408_s13 }
  0x2d   : > { %s406_s21 = sshll.u32 %s404_s5, 4  ;;  %p2147_p8 = pnand %p1669_p6, %p46_p2  ;;  %s407_s21 = int_to_ptr.hbm [resolvable:$true] %s406_s21 }
  0x2e   : > { %s396_s3 = scalar_lea.sflag [#allocation3], %s395_s26  ;;  %s1870_s7 = sshra.s32 %s407_s21, 4  ;;  %s1871_s7 = int_to_ptr.hbm [resolvable:$true] %s1870_s7 }
  0x2f   : > { %s1872_s9 = scalar_lea.hbm %s1871_s7, 32  ;;  %p1874_p9 = pneg %p2147_p8 }
  0x30   : > { %p1873_p7 = scmp.ne.s32.totalorder %s1871_s7, %s1872_s9  ;;  %s1877_s27 = scalar_lea.hbm %s2239_s0, 64 }
  0x31   : > { %p1878_p0 = scmp.lt.s32.totalorder %s1871_s7, %s2239_s0  ;;  %p1879_p2 = scmp.lt.s32.totalorder %s1877_s27, %s1872_s9 }
  0x32   : > { %p1875_p10 = pnand %p1874_p9, %p1873_p7 }
  0x33   : > { %p1880_p6 = por %p1879_p2, %p1878_p0 }
  0x34   : > { %p1876_p11 = pneg %p1875_p10 }
  0x36   : > { %p1881_p5 = pnand %p1880_p6, %p1876_p11 }
  0x38   : > { %1884 = shalt.err (!%p1881_p5)
}
  0x39   : > { %1659 = dma.hbm_to_vmem [thread:$0]  (!%p2147_p8), %s407_s21, 512, %s409_s13, %s396_s3  }
  0x3a   : > { %417 = sbr.rel (%p2076_p3) target bundleno = 786 (0x312), region = 64  ;;  %s2164_s26 = sand.u32 (!%p2076_p3), 1, %s1970_s18  }
  0x3b   : > { %s1288_s29 = sshll.u32 (!%p2076_p3), %s2164_s26, 5  ;;  %s420_s30 = scalar_lea.sflag (!%p2076_p3), [#allocation3], %s2164_s26 }
  0x3c   : > { %s2168_s14 = scalar_lea.vmem (!%p2076_p3), [#allocation2], %s1288_s29 }
  0x3f   : > { %1945 = dma.done.wait (%p2129_p12), %s420_s30, 512  }
  0x40   : > { %1947 = vsyncadd (%p2129_p12), %s420_s30, 4294966784 }
  0x41   : > { %1949 = dma.done.wait (%p51_p1), [#allocation6], 4992  }
  0x42   : > { %1951 = vsyncadd (%p51_p1), [#allocation6], 4294962304 }
  0x43   : > { %1953 = dma.done.wait (%p51_p1), [#allocation9], 2048  }
  0x44   : > { %1955 = vsyncadd (%p51_p1), [#allocation9], 4294965248 }
  0x45   : > { %1957 = dma.done.wait (%p51_p1), [#allocation12], 1024  }
  0x46   : > { %1959 = vsyncadd (%p51_p1), [#allocation12], 4294966272  ;;  %v1560_v0 = vld [vmem:[#allocation5 + $0x38] sm:$0xff]  ;;  %v1417_v3 = vld [vmem:[#allocation5 + $0xf0] sm:$0xf]  ;;  %vm752_vm0 = vcmask 1044480  }
  0x47   : > { %v1568_v1 = vld [vmem:[#allocation5 + $0x78] sm:$0xff]  ;;  %v1583_v4 = vld [vmem:[#allocation5 + $0xf0] sm:$0x10]  ;;  %756 = vmatpush.bf16.msra.mxu0 %v1560_v0  ;;  %v1582_v10 = vld [vmem:[#allocation5 + $0xe8] sm:$0xff]  ;;  %vm748_vm1 = vcmask 867328   ;;  %s1294_s27 = sshll.u32 %s2164_s26, 2 }
  0x48   : > { %v1576_v2 = vld [vmem:[#allocation5 + $0xb8] sm:$0xff]  ;;  %769 = vmatpush.bf16.msra.mxu1 %v1568_v1  ;;  %v1418_v5 = vor.u32 %v1583_v4, %v1417_v3  ;;  %v1559_v6 = vld [vmem:[#allocation5 + $0x30] sm:$0xff]  ;;  %v1558_v11 = vld [vmem:[#allocation5 + $0x28] sm:$0xff]  ;;  %s1549_s16 = sshll.u32 %s2071_s24, 2  ;;  %s487_s7 = scalar_lea.vmem [#allocation13], %s1294_s27 }
  0x49   : > { %v1567_v7 = vld [vmem:[#allocation5 + $0x70] sm:$0xff]  ;;  %782 = vmatpush.bf16.msra.mxu2 %v1576_v2  ;;  %v1566_v12 = vld [vmem:[#allocation5 + $0x68] sm:$0xff]  ;;  %v1581_v14 = vld [vmem:[#allocation5 + $0xe0] sm:$0xff]  ;;  %s1153_s3 = scalar_lea.hbm %s2250_s11, %s1549_s16  ;;  %s1155_s9 = sshll.u32 %s487_s7, 4  ;;  %s1156_s9 = int_to_ptr.vmem [resolvable:$true] %s1155_s9 }
  0x4a   : > { %v1575_v8 = vld [vmem:[#allocation5 + $0xb0] sm:$0xff]  ;;  %v754_v9 = vsel %vm752_vm0, %v1418_v5, 0  ;;  %v1574_v13 = vld [vmem:[#allocation5 + $0xa8] sm:$0xff]  ;;  %v1557_v15 = vld [vmem:[#allocation5 + $0x20] sm:$0xff]  ;;  %s1157_s25 = sshll.u32 %s1153_s3, 4  ;;  %s1143_s12 = scalar_lea.sflag [#allocation4], %s2164_s26  ;;  %s1158_s25 = int_to_ptr.hbm [resolvable:$true] %s1157_s25 }
  0x4b   : > { %796 = vmatpush.bf16.msra.mxu3 %v754_v9  ;;  %757 = vmatpush.bf16.msra.mxu0 %v1559_v6  ;;  %v1565_v16 = vld [vmem:[#allocation5 + $0x60] sm:$0xff]  ;;  %v1580_v18 = vld [vmem:[#allocation5 + $0xd8] sm:$0xff]  ;;  %v1579_v22 = vld [vmem:[#allocation5 + $0xd0] sm:$0xff]  ;;  %s1914_s24 = sshra.s32 %s1158_s25, 4  ;;  %s1920_s16 = scalar_lea.hbm %s2250_s11, 8  ;;  %s1915_s24 = int_to_ptr.hbm [resolvable:$true] %s1914_s24 }
  0x4c   : > { %770 = vmatpush.bf16.msra.mxu1 %v1567_v7  ;;  %v1573_v17 = vld [vmem:[#allocation5 + $0xa0] sm:$0xff]  ;;  %v1556_v19 = vld [vmem:[#allocation5 + $0x18] sm:$0xff]  ;;  %v1555_v23 = vld [vmem:[#allocation5 + $0x10] sm:$0xff]  ;;  %s1916_s21 = scalar_lea.hbm %s1915_s24, 4  ;;  %p1921_p12 = scmp.lt.s32.totalorder %s1915_s24, %s2250_s11 }
  0x4d   : > { %783 = vmatpush.bf16.msra.mxu2 %v1575_v8  ;;  %v1564_v20 = vld [vmem:[#allocation5 + $0x58] sm:$0xff]  ;;  %v1563_v24 = vld [vmem:[#allocation5 + $0x50] sm:$0xff]  ;;  %v1578_v26 = vld [vmem:[#allocation5 + $0xc8] sm:$0xff]  ;;  %p1917_p1 = scmp.ne.s32.totalorder %s1915_s24, %s1916_s21  ;;  %p1922_p8 = scmp.lt.s32.totalorder %s1920_s16, %s1916_s21 }
  0x4e   : > { %v1572_v21 = vld [vmem:[#allocation5 + $0x98] sm:$0xff]  ;;  %v1571_v25 = vld [vmem:[#allocation5 + $0x90] sm:$0xff]  ;;  %v1554_v27 = vld [vmem:[#allocation5 + $0x8] sm:$0xff] }
  0x4f   : > { %797 = vmatpush.bf16.msra.mxu3 %v1582_v10  ;;  %758 = vmatpush.bf16.msra.mxu0 %v1558_v11  ;;  %v1562_v28 = vld [vmem:[#allocation5 + $0x48] sm:$0xff]  ;;  %v1577_v30 = vld [vmem:[#allocation5 + $0xc0] sm:$0xff]  ;;  %v492_v32 = vld [vmem:[%s2168_s14 + $0x18] sm:$0xff]  ;;  %p1918_p3 = pnand %p1917_p1, %p2133_p13  ;;  %p1923_p7 = por %p1922_p8, %p1921_p12 }
  0x50   : > { %771 = vmatpush.bf16.msra.mxu1 %v1566_v12  ;;  %v1570_v29 = vld [vmem:[#allocation5 + $0x88] sm:$0xff]  ;;  %v1553_v31 = vld [vmem:[#allocation5] sm:$0xff]  ;;  %v491_v37 = vld [vmem:[%s2168_s14 + $0x10] sm:$0xff]  ;;  %v496_v39 = vpack.c.bf16 %v492_v32, %v492_v32 }
  0x51   : > { %784 = vmatpush.bf16.msra.mxu2 %v1574_v13  ;;  %v1561_v33 = vld [vmem:[#allocation5 + $0x40] sm:$0xff]  ;;  %v490_v35 = vld [vmem:[%s2168_s14 + $0x8] sm:$0xff]  ;;  %v1591_v38 = vld [vmem:[#allocation7 + $0x38] sm:$0xff]  ;;  %v495_v42 = vpack.c.bf16 %v491_v37, %v491_v37  ;;  %p1919_p5 = pneg %p1918_p3 }
  0x52   : > { %v489_v34 = vld [vmem:[%s2168_s14] sm:$0xff]  ;;  %v494_v41 = vpack.c.bf16 %v490_v35, %v490_v35  ;;  %v1590_v43 = vld [vmem:[#allocation7 + $0x30] sm:$0xff]  ;;  %v1588_v45 = vld [vmem:[#allocation7 + $0x20] sm:$0xff] }
  0x53   : > { %798 = vmatpush.bf16.msra.mxu3 %v1581_v14  ;;  %759 = vmatpush.bf16.msra.mxu0 %v1557_v15  ;;  %v1569_v36 = vld [vmem:[#allocation5 + $0x80] sm:$0xff]  ;;  %v493_v40 = vpack.c.bf16 %v489_v34, %v489_v34  ;;  %v1587_v46 = vld [vmem:[#allocation7 + $0x18] sm:$0xff]  ;;  %v1586_v47 = vld [vmem:[#allocation7 + $0x10] sm:$0xff]  ;;  %p1924_p9 = pnand %p1923_p7, %p1919_p5 }
  0x54   : > { %772 = vmatpush.bf16.msra.mxu1 %v1565_v16  ;;  %v1589_v44 = vld [vmem:[#allocation7 + $0x28] sm:$0xff]  ;;  %v1584_v49 = vld [vmem:[#allocation7] sm:$0xff]  ;;  %v1599_v50 = vld [vmem:[#allocation8 + $0x38] sm:$0xff] }
  0x55   : > { %785 = vmatpush.bf16.msra.mxu2 %v1573_v17  ;;  %v1585_v48 = vld [vmem:[#allocation7 + $0x8] sm:$0xff]  ;;  %v1598_v51 = vld [vmem:[#allocation8 + $0x30] sm:$0xff]  ;;  %v1596_v53 = vld [vmem:[#allocation8 + $0x20] sm:$0xff] }
  0x56   : > { %v1597_v52 = vld [vmem:[#allocation8 + $0x28] sm:$0xff]  ;;  %v1595_v55 = vld [vmem:[#allocation8 + $0x18] sm:$0xff]  ;;  %v1594_v59 = vld [vmem:[#allocation8 + $0x10] sm:$0xff] }
  0x57   : > { %799 = vmatpush.bf16.msra.mxu3 %v1580_v18  ;;  %760 = vmatpush.bf16.msra.mxu0 %v1556_v19  ;;  %v1715_v54 = vld [vmem:[%s2241_s2] ss:$0 sm:$0xff]  ;;  %v1592_v8 = vld [vmem:[#allocation8] sm:$0xff]  ;;  %v1607_v9 = vld [vmem:[#allocation10 + $0x38] sm:$0xff] }
  0x58   : > { %773 = vmatpush.bf16.msra.mxu1 %v1564_v20  ;;  %v1593_v7 = vld [vmem:[#allocation8 + $0x8] sm:$0xff]  ;;  %v1606_v10 = vld [vmem:[#allocation10 + $0x30] sm:$0xff]  ;;  %v1604_v12 = vld [vmem:[#allocation10 + $0x20] sm:$0xff] }
  0x59   : > { %786 = vmatpush.bf16.msra.mxu2 %v1572_v21  ;;  %v1605_v11 = vld [vmem:[#allocation10 + $0x28] sm:$0xff]  ;;  %v1603_v13 = vld [vmem:[#allocation10 + $0x18] sm:$0xff]  ;;  %v1602_v14 = vld [vmem:[#allocation10 + $0x10] sm:$0xff] }
  0x5a   : > { %v1716_v15 = vld [vmem:[%s2243_s4] ss:$0 sm:$0xff] }
  0x5b   : > { %800 = vmatpush.bf16.msra.mxu3 %v1579_v22  ;;  %761 = vmatpush.bf16.msra.mxu0 %v1555_v23  ;;  %v1601_v21 = vld [vmem:[#allocation10 + $0x8] sm:$0xff]  ;;  %v1600_v22 = vld [vmem:[#allocation10] sm:$0xff]  ;;  %v1615_v23 = vld [vmem:[#allocation11 + $0x38] sm:$0xff] }
  0x5c   : > { %774 = vmatpush.bf16.msra.mxu1 %v1563_v24  ;;  %v1614_v24 = vld [vmem:[#allocation11 + $0x30] sm:$0xff]  ;;  %v1609_v35 = vld [vmem:[#allocation11 + $0x8] sm:$0xff] }
  0x5d   : > { %787 = vmatpush.bf16.msra.mxu2 %v1571_v25  ;;  %v1613_v25 = vld [vmem:[#allocation11 + $0x28] sm:$0xff] }
  0x5e   : > { %v1718_v37 = vld [vmem:[%s2247_s8] ss:$0 sm:$0xff] }
  0x5f   : > { %801 = vmatpush.bf16.msra.mxu3 %v1578_v26  ;;  %762 = vmatpush.bf16.msra.mxu0 %v1554_v27  ;;  %v1612_v26 = vld [vmem:[#allocation11 + $0x20] sm:$0xff]  ;;  %v1611_v27 = vld [vmem:[#allocation11 + $0x18] sm:$0xff] }
  0x60   : > { %775 = vmatpush.bf16.msra.mxu1 %v1562_v28  ;;  %v1610_v28 = vld [vmem:[#allocation11 + $0x10] sm:$0xff] }
  0x61   : > { %788 = vmatpush.bf16.msra.mxu2 %v1570_v29  ;;  %v1717_v29 = vld [vmem:[%s2245_s6] ss:$0 sm:$0xff] }
  0x63   : > { %802 = vmatpush.bf16.msra.mxu3 %v1577_v30  ;;  %763 = vmatpush.bf16.msra.mxu0 %v1553_v31 }
  0x64   : > { %776 = vmatpush.bf16.msra.mxu1 %v1561_v33 }
  0x65   : > { %789 = vmatpush.bf16.msra.mxu2 %v1569_v36  ;;  %v1608_v36 = vld [vmem:[#allocation11] sm:$0xff] }
  0x66   : > { %1419 = vmatmul.msk.bf16.vlgmr.msra.gmra.mxu3 %vm748_vm1, %v496_v39  ;;  %764 = vmatmul.bf16.vlgmr.msra.gmra.mxu0 %v493_v40 }
  0x67   : > { %878 = vmatpush.bf16.msrb.mxu3 %v1591_v38  ;;  %777 = vmatmul.bf16.vlgmr.msra.gmra.mxu1 %v494_v41 }
  0x68   : > { %790 = vmatmul.bf16.vlgmr.msra.gmra.mxu2 %v495_v42  ;;  %961 = vmatpush.bf16.msrb.mxu0 %v1599_v50 }
  0x69   : > { %1044 = vmatpush.bf16.msrb.mxu1 %v1607_v9  ;;  %1127 = vmatpush.bf16.msrb.mxu2 %v1615_v23 }
  0x6b   : > { %879 = vmatpush.bf16.msrb.mxu3 %v1590_v43  ;;  %v1719_v43 = vld [vmem:[%s2249_s10] ss:$0 sm:$0xff] }
  0x6c   : > { %962 = vmatpush.bf16.msrb.mxu0 %v1598_v51 }
  0x6d   : > { %1045 = vmatpush.bf16.msrb.mxu1 %v1606_v10  ;;  %1128 = vmatpush.bf16.msrb.mxu2 %v1614_v24 }
  0x6f   : > { %880 = vmatpush.bf16.msrb.mxu3 %v1589_v44 }
  0x70   : > { %963 = vmatpush.bf16.msrb.mxu0 %v1597_v52 }
  0x71   : > { %1046 = vmatpush.bf16.msrb.mxu1 %v1605_v11  ;;  %1129 = vmatpush.bf16.msrb.mxu2 %v1613_v25 }
  0x73   : > { %881 = vmatpush.bf16.msrb.mxu3 %v1588_v45 }
  0x74   : > { %964 = vmatpush.bf16.msrb.mxu0 %v1596_v53 }
  0x75   : > { %1047 = vmatpush.bf16.msrb.mxu1 %v1604_v12  ;;  %1130 = vmatpush.bf16.msrb.mxu2 %v1612_v26 }
  0x77   : > { %882 = vmatpush.bf16.msrb.mxu3 %v1587_v46 }
  0x78   : > { %965 = vmatpush.bf16.msrb.mxu0 %v1595_v55 }
  0x79   : > { %1048 = vmatpush.bf16.msrb.mxu1 %v1603_v13  ;;  %1131 = vmatpush.bf16.msrb.mxu2 %v1611_v27 }
  0x7b   : > { %883 = vmatpush.bf16.msrb.mxu3 %v1586_v47 }
  0x7c   : > { %966 = vmatpush.bf16.msrb.mxu0 %v1594_v59 }
  0x7d   : > { %1049 = vmatpush.bf16.msrb.mxu1 %v1602_v14  ;;  %1132 = vmatpush.bf16.msrb.mxu2 %v1610_v28 }
  0x7f   : > { %884 = vmatpush.bf16.msrb.mxu3 %v1585_v48 }
  0x80   : > { %967 = vmatpush.bf16.msrb.mxu0 %v1593_v7 }
  0x81   : > { %1050 = vmatpush.bf16.msrb.mxu1 %v1601_v21  ;;  %1133 = vmatpush.bf16.msrb.mxu2 %v1609_v35 }
  0x83   : > { %885 = vmatpush.bf16.msrb.mxu3 %v1584_v49 }
  0x84   : > { %968 = vmatpush.bf16.msrb.mxu0 %v1592_v8 }
  0x85   : > { %1051 = vmatpush.bf16.msrb.mxu1 %v1600_v22  ;;  %1134 = vmatpush.bf16.msrb.mxu2 %v1608_v36 }
  0xe3   : > { %v765_v56 = vpop.f32.mrf.mxu0 }
  0xe4   : > { %v778_v57 = vpop.f32.mrf.mxu1  ;;  %v766_v58 = vadd.f32 %v1715_v54, %v765_v56 }
  0xe6   : > { %v779_v60 = vadd.f32 %v778_v57, %v766_v58 }
  0xe9   : > { %v804_v61 = vpop.f32.mrf.mxu3 }
  0xeb   : > { %v791_v62 = vpop.f32.mrf.mxu2  ;;  %v767_v0 = vpop.f32.mrf.mxu0 }
  0xec   : > { %v792_v63 = vadd.f32 %v791_v62, %v779_v60  ;;  %v780_v1 = vpop.f32.mrf.mxu1 }
  0xee   : > { %v805_v2 = vadd.f32 %v804_v61, %v792_v63 }
  0xf0   : > { %v808_v3 = vmax.f32 %v805_v2, 0.0 }
  0xf1   : > { %v806_v4 = vpop.f32.mrf.mxu3 }
  0xf2   : > { %v809_v5 = vpack.c.bf16 %v808_v3, %v808_v3 }
  0xf3   : > { %v793_v6 = vpop.f32.mrf.mxu2 }
  0xf4   : > { %886 = vmatmul.bf16.vlgmr.msrb.gmra.mxu3 %v809_v5 }
 0x177   : > { %v887_v16 = vpop.f32.mrf.mxu3 }
 0x178   : > { %v888_v17 = vadd.f32 %v1716_v15, %v887_v16 }
 0x17a   : > { %v891_v18 = vmax.f32 %v888_v17, 0.0 }
 0x17c   : > { %v892_v19 = vpack.c.bf16 %v891_v18, %v891_v18 }
 0x17e   : > { %969 = vmatmul.bf16.vlgmr.msrb.gmra.mxu0 %v892_v19 }
 0x17f   : > { %v889_v20 = vpop.f32.mrf.mxu3 }
 0x1fb   : > { %v970_v30 = vpop.f32.mrf.mxu0 }
 0x1fc   : > { %v971_v31 = vadd.f32 %v1717_v29, %v970_v30 }
 0x1fe   : > { %v974_v32 = vmax.f32 %v971_v31, 0.0 }
 0x200   : > { %v975_v33 = vpack.c.bf16 %v974_v32, %v974_v32 }
 0x202   : > { %1052 = vmatmul.bf16.vlgmr.msrb.gmra.mxu1 %v975_v33 }
 0x203   : > { %v972_v34 = vpop.f32.mrf.mxu0 }
 0x27f   : > { %v1053_v38 = vpop.f32.mrf.mxu1 }
 0x280   : > { %v1054_v39 = vadd.f32 %v1718_v37, %v1053_v38 }
 0x282   : > { %v1057_v40 = vmax.f32 %v1054_v39, 0.0 }
 0x284   : > { %v1058_v41 = vpack.c.bf16 %v1057_v40, %v1057_v40 }
 0x286   : > { %1135 = vmatmul.bf16.vlgmr.msrb.gmra.mxu2 %v1058_v41 }
 0x287   : > { %v1055_v42 = vpop.f32.mrf.mxu1 }
 0x309   : > { %v1136_v44 = vpop.f32.mrf.mxu2 }
 0x30a   : > { %v1137_v45 = vadd.f32 %v1719_v43, %v1136_v44 }
 0x30c   : > { %v1140_v46 = vpack.c.bf16 %v1137_v45, %v1137_v45 }
 0x30e   : > { %1141 = vst [vmem:[%s487_s7] sm:$0xf] %v1140_v46 }
 0x30f   : > { %1927 = shalt.err (!%p1924_p9)
}
 0x310   : > { %1638 = dma.vmem_to_hbm [thread:$0]  (%p2133_p13), %s1156_s9, 64, %s1158_s25, %s1143_s12  }
 0x311   : > { %v1138_v47 = vpop.f32.mrf.mxu2 }
 0x312 PF: > { %s1169_s26 = sand.u32 1, %s1966_s17   ;;  %p2267_p10 = scmp.ge.s32.totalorder %s1978_s20, 2 }
 0x313   : > { %s1170_s29 = scalar_lea.sflag [#allocation4], %s1169_s26 }
 0x314   : > { %p1661_p11 = pnand %p2267_p10, %p2138_p4 }
 0x316   : > { %p1662_p0 = pneg %p1661_p11 }
 0x318   : > { %1961 = dma.done.wait (%p1662_p0), %s1170_s29, 64  }
 0x319   : > { %1963 = vsyncadd (%p1662_p0), %s1170_s29, 4294967232  ;;  %p27_p2 = scmp.ge.s32.totalorder %s2113_s28, 4   ;;  %s2268_s17 = smov %s1970_s18 }
 0x31a   : > { %s2269_s18 = smov %s1974_s19  ;;  %s2270_s19 = smov %s2125_s1 }
 0x31b   : > { %s2271_s20 = smov %s2113_s28  ;;  %29 = sbr.rel (!%p27_p2) target bundleno = 14 (0xe), region = 129 }
 0x320   :  { %1176 = vsyncpa [#allocation3], 1 }
 0x321   :  { %1178 = vsyncpa [#allocation3 + $0x1], 1 }
 0x322   :  { %1179 = vsyncpa [#allocation6], 1 }
 0x323   :  { %1180 = vsyncpa [#allocation9], 1 }
 0x324   :  { %1181 = vsyncpa [#allocation12], 1 }
 0x325   :  { %1182 = vsyncpa [#allocation4], 1 }
 0x326   :  { %1184 = vsyncpa [#allocation4 + $0x1], 1 }

</bundles_post_ra>
